<compile_context>
chip_gen: v7x
topology: tpu7x:2x2x1
jax: 0.10.0
libtpu: 0.0.40
codegen_flags: <defaults>
</compile_context>

<pallas_src>
import jax
import jax.numpy as jnp
from jax.experimental import pallas as pl
from jax.experimental.pallas import tpu as pltpu

LN_EPS = 1e-12  # BERT-style LayerNorm epsilon


def _bit_output_kernel(x_ref, w_ref, b_ref, resid_ref, gamma_ref, beta_ref,
                       o_ref, acc_ref):
    k = pl.program_id(1)

    # ---- init accumulator at the first K step --------------------------
    @pl.when(k == 0)
    def _():
        acc_ref[...] = jnp.zeros_like(acc_ref)

    # ---- dense (Linear) partial product on the MXU ----------------------
    acc_ref[...] += jnp.dot(x_ref[...], w_ref[...],
                            preferred_element_type=jnp.float32)

    # ---- epilogue at the last K step ------------------------------------
    @pl.when(k == pl.num_programs(1) - 1)
    def _():
        # bias (b_dense + dense_offset folded) + residual; dropout is identity
        y = acc_ref[...] + b_ref[...] + resid_ref[...].astype(jnp.float32)

        # LayerNorm over the feature (lane) axis, f32 math on every chip gen
        mean = jnp.mean(y, axis=-1, keepdims=True)
        centered = y - mean
        var = jnp.mean(centered * centered, axis=-1, keepdims=True)
        inv = jax.lax.rsqrt(var + LN_EPS)
        # beta_ref already has the LayerNorm bit-offset folded in
        out = centered * inv * gamma_ref[...] + beta_ref[...]

        o_ref[...] = out.astype(o_ref.dtype)


def bit_output(hidden_states, input_tensor, w_dense, b_dense, gamma, beta,
               dense_offset=None, ln_offset=None, *,
               token_tile=256, k_tile=256,
               w_transposed=False, mxu_dtype=None):
    """hidden_states: [B, S, I], input_tensor: [B, S, H] -> [B, S, H].

    token_tile / k_tile : main tuning knobs (256 is a good default on
        v6e/v7x; use k_tile=128 on v5e).  Both are clamped to the actual
        dims for small shapes.
    w_transposed : pass w_dense already as [I, H] to skip the transpose.
    mxu_dtype    : e.g. jnp.bfloat16 to feed the MXU in bf16 (accumulation
        stays f32).  Default keeps the input dtype.
    """
    B, S, I = hidden_states.shape
    H = input_tensor.shape[-1]
    M = B * S
    out_dtype = input_tensor.dtype

    tm = min(token_tile, M)
    tk = min(k_tile, I)
    assert M % tm == 0, "B*S must be divisible by the token tile"
    assert I % tk == 0, "intermediate dim must be divisible by the K tile"

    x = hidden_states.reshape(M, I)
    resid = input_tensor.reshape(M, H)

    # nn.Linear computes x @ W^T; accept a pre-transposed [I, H] weight to
    # avoid rewriting the full weight through HBM on every call.
    w_t = w_dense if w_transposed else w_dense.T  # [I, H]

    if mxu_dtype is not None:
        x = x.astype(mxu_dtype)
        w_t = w_t.astype(mxu_dtype)

    # Fold the constant per-feature vectors (fewer broadcast streams/adds).
    zero = jnp.zeros((H,), jnp.float32)
    d_off = zero if dense_offset is None else dense_offset.astype(jnp.float32)
    l_off = zero if ln_offset is None else ln_offset.astype(jnp.float32)
    b_eff = (b_dense.astype(jnp.float32) + d_off).reshape(1, H)
    beta_eff = (beta.astype(jnp.float32) + l_off).reshape(1, H)
    g2 = gamma.astype(jnp.float32).reshape(1, H)

    grid = (M // tm, I // tk)

    itemsize = lambda a: jnp.dtype(a.dtype).itemsize
    cost = pl.CostEstimate(
        flops=2 * M * I * H,
        transcendentals=M,  # one rsqrt per token row
        bytes_accessed=int(M * I * itemsize(x) + I * H * itemsize(w_t)
                           + M * H * itemsize(resid)
                           + M * H * jnp.dtype(out_dtype).itemsize),
    )

    out = pl.pallas_call(
        _bit_output_kernel,
        out_shape=jax.ShapeDtypeStruct((M, H), out_dtype),
        grid_spec=pltpu.PrefetchScalarGridSpec(
            num_scalar_prefetch=0,
            grid=grid,
            in_specs=[
                pl.BlockSpec((tm, tk), lambda i, k: (i, k)),   # x tile
                pl.BlockSpec((tk, H), lambda i, k: (k, 0)),    # W^T chunk
                pl.BlockSpec((1, H), lambda i, k: (0, 0)),     # b_dense + dense_offset
                pl.BlockSpec((tm, H), lambda i, k: (i, 0)),    # residual tile
                pl.BlockSpec((1, H), lambda i, k: (0, 0)),     # gamma
                pl.BlockSpec((1, H), lambda i, k: (0, 0)),     # beta + ln_offset
            ],
            out_specs=pl.BlockSpec((tm, H), lambda i, k: (i, 0)),
            scratch_shapes=[pltpu.VMEM((tm, H), jnp.float32)],
        ),
        compiler_params=pltpu.CompilerParams(
            dimension_semantics=("parallel", "arbitrary")),
        cost_estimate=cost,
    )(x, w_t, b_eff, resid, g2, beta_eff)

    return out.reshape(B, S, H)


def _reference(hidden_states, input_tensor, w_dense, b_dense, gamma, beta,
               dense_offset, ln_offset):
    h = jnp.einsum("bsi,hi->bsh", hidden_states, w_dense) + b_dense + dense_offset
    y = h + input_tensor
    mean = jnp.mean(y, axis=-1, keepdims=True)
    var = jnp.mean((y - mean) ** 2, axis=-1, keepdims=True)
    normed = (y - mean) / jnp.sqrt(var + LN_EPS)
    return normed * gamma + beta + ln_offset


if __name__ == "__main__":
    key = jax.random.PRNGKey(0)
    B, S, I, H = 2, 8, 64, 32  # batch, seq, intermediate, hidden

    ks = jax.random.split(key, 8)
    hidden_states = jax.random.normal(ks[0], (B, S, I), jnp.float32)
    input_tensor = jax.random.normal(ks[1], (B, S, H), jnp.float32)

    # Deterministic synthetic parameters (BertOutput: Linear(I->H), LayerNorm(H))
    w_dense = jax.random.normal(ks[2], (H, I), jnp.float32) * 0.05
    b_dense = jax.random.normal(ks[3], (H,), jnp.float32) * 0.05
    gamma = 1.0 + 0.1 * jax.random.normal(ks[4], (H,), jnp.float32)
    beta = 0.1 * jax.random.normal(ks[5], (H,), jnp.float32)

    # "offsets" dict entries from BitAdditiveBias
    dense_offset = 0.02 * jax.random.normal(ks[6], (H,), jnp.float32)
    ln_offset = 0.02 * jax.random.normal(ks[7], (H,), jnp.float32)

    out = bit_output(hidden_states, input_tensor, w_dense, b_dense, gamma,
                     beta, dense_offset, ln_offset)
    out = jax.block_until_ready(out)

    ref = _reference(hidden_states, input_tensor, w_dense, b_dense, gamma,
                     beta, dense_offset, ln_offset)
    assert out.shape == (B, S, H)
    assert jnp.allclose(out, ref, atol=1e-4, rtol=1e-4), "mismatch vs reference"

    print("KERNEL_OK")
</pallas_src>

<mosaic_0001>
module attributes {stable_mosaic.version = 11 : i64} {
  func.func @_bit_output_kernel(%arg0: i32, %arg1: i32, %arg2: memref<16x64xf32, #tpu.memory_space<vmem>>, %arg3: memref<64x32xf32, #tpu.memory_space<vmem>>, %arg4: memref<1x32xf32, #tpu.memory_space<vmem>>, %arg5: memref<16x32xf32, #tpu.memory_space<vmem>>, %arg6: memref<1x32xf32, #tpu.memory_space<vmem>>, %arg7: memref<1x32xf32, #tpu.memory_space<vmem>>, %arg8: memref<16x32xf32, #tpu.memory_space<vmem>>, %arg9: memref<16x32xf32, #tpu.memory_space<vmem>>) attributes {dimension_semantics = [#tpu.dimension_semantics<parallel>, #tpu.dimension_semantics<arbitrary>], iteration_bounds = array<i64: 1, 1>, scalar_prefetch = 0 : i64, scratch_operands = 1 : i64, tpu.core_type = #tpu.core_type<tc>, window_params = [{transform_indices = @transform_0, window_bounds = array<i64: 16, 64>}, {transform_indices = @transform_1, window_bounds = array<i64: 64, 32>}, {pipeline_mode = #tpu.pipeline_mode<synchronous>, transform_indices = @transform_2, window_bounds = array<i64: 1, 32>}, {transform_indices = @transform_3, window_bounds = array<i64: 16, 32>}, {pipeline_mode = #tpu.pipeline_mode<synchronous>, transform_indices = @transform_4, window_bounds = array<i64: 1, 32>}, {pipeline_mode = #tpu.pipeline_mode<synchronous>, transform_indices = @transform_5, window_bounds = array<i64: 1, 32>}, {transform_indices = @transform_6, window_bounds = array<i64: 16, 32>}]} {
    %c0_i32 = arith.constant 0 : i32
    %0 = arith.cmpi eq, %arg1, %c0_i32 : i32
    %1 = arith.extui %0 : i1 to i32
    %c0_i32_0 = arith.constant 0 : i32
    %2 = arith.cmpi ne, %1, %c0_i32_0 : i32
    scf.if %2 {
      %cst_10 = arith.constant 0.000000e+00 : f32
      %12 = vector.broadcast %cst_10 : f32 to vector<16x32xf32>
      %c0_11 = arith.constant 0 : index
      %c0_12 = arith.constant 0 : index
      %13 = vector.load %arg9[%c0_11, %c0_12] : memref<16x32xf32, #tpu.memory_space<vmem>>, vector<16x32xf32>
      tpu.vector_store %arg9[%c0_11, %c0_12], %12 {strides = array<i32>} : memref<16x32xf32, #tpu.memory_space<vmem>>, vector<16x32xf32>,
    } else {
    }
    %c0 = arith.constant 0 : index
    %c0_1 = arith.constant 0 : index
    %3 = vector.load %arg9[%c0, %c0_1] : memref<16x32xf32, #tpu.memory_space<vmem>>, vector<16x32xf32>
    %c0_2 = arith.constant 0 : index
    %c0_3 = arith.constant 0 : index
    %4 = vector.load %arg2[%c0_2, %c0_3] : memref<16x64xf32, #tpu.memory_space<vmem>>, vector<16x64xf32>
    %c0_4 = arith.constant 0 : index
    %c0_5 = arith.constant 0 : index
    %5 = vector.load %arg3[%c0_4, %c0_5] : memref<64x32xf32, #tpu.memory_space<vmem>>, vector<64x32xf32>
    %cst = arith.constant dense<0.000000e+00> : vector<16x32xf32>
    %6 = tpu.matmul %4, %5, %cst {dimension_numbers = #tpu.dot_dimension_numbers<[1], [0], [0], [1], [0, 0, 1, 1], [], []>} : vector<16x64xf32>, vector<64x32xf32>, vector<16x32xf32> -> vector<16x32xf32>
    %7 = arith.addf %3, %6 : vector<16x32xf32>
    %c0_6 = arith.constant 0 : index
    %c0_7 = arith.constant 0 : index
    %8 = vector.load %arg9[%c0_6, %c0_7] : memref<16x32xf32, #tpu.memory_space<vmem>>, vector<16x32xf32>
    tpu.vector_store %arg9[%c0_6, %c0_7], %7 {strides = array<i32>} : memref<16x32xf32, #tpu.memory_space<vmem>>, vector<16x32xf32>,
    %c0_i32_8 = arith.constant 0 : i32
    %9 = arith.cmpi eq, %arg1, %c0_i32_8 : i32
    %10 = arith.extui %9 : i1 to i32
    %c0_i32_9 = arith.constant 0 : i32
    %11 = arith.cmpi ne, %10, %c0_i32_9 : i32
    scf.if %11 {
      %c0_10 = arith.constant 0 : index
      %c0_11 = arith.constant 0 : index
      %12 = vector.load %arg9[%c0_10, %c0_11] : memref<16x32xf32, #tpu.memory_space<vmem>>, vector<16x32xf32>
      %c0_12 = arith.constant 0 : index
      %c0_13 = arith.constant 0 : index
      %13 = vector.load %arg4[%c0_12, %c0_13] : memref<1x32xf32, #tpu.memory_space<vmem>>, vector<1x32xf32>
      %14 = vector.broadcast %13 : vector<1x32xf32> to vector<16x32xf32>
      %15 = arith.addf %12, %14 : vector<16x32xf32>
      %c0_14 = arith.constant 0 : index
      %c0_15 = arith.constant 0 : index
      %16 = vector.load %arg5[%c0_14, %c0_15] : memref<16x32xf32, #tpu.memory_space<vmem>>, vector<16x32xf32>
      %17 = arith.addf %15, %16 : vector<16x32xf32>
      %cst_16 = arith.constant dense<0.000000e+00> : vector<16xf32>
      %18 = vector.multi_reduction <add>, %17, %cst_16 [1] : vector<16x32xf32> to vector<16xf32>
      %19 = vector.shape_cast %18 : vector<16xf32> to vector<16x1xf32>
      %cst_17 = arith.constant 3.200000e+01 : f32
      %20 = vector.broadcast %cst_17 : f32 to vector<16x1xf32>
      %21 = arith.divf %19, %20 : vector<16x1xf32>
      %22 = vector.broadcast %21 : vector<16x1xf32> to vector<16x32xf32>
      %23 = arith.subf %17, %22 : vector<16x32xf32>
      %24 = arith.mulf %23, %23 : vector<16x32xf32>
      %cst_18 = arith.constant dense<0.000000e+00> : vector<16xf32>
      %25 = vector.multi_reduction <add>, %24, %cst_18 [1] : vector<16x32xf32> to vector<16xf32>
      %26 = vector.shape_cast %25 : vector<16xf32> to vector<16x1xf32>
      %cst_19 = arith.constant 3.200000e+01 : f32
      %27 = vector.broadcast %cst_19 : f32 to vector<16x1xf32>
      %28 = arith.divf %26, %27 : vector<16x1xf32>
      %cst_20 = arith.constant 9.99999996E-13 : f32
      %29 = vector.broadcast %cst_20 : f32 to vector<16x1xf32>
      %30 = arith.addf %28, %29 : vector<16x1xf32>
      %31 = math.rsqrt %30 : vector<16x1xf32>
      %32 = vector.broadcast %31 : vector<16x1xf32> to vector<16x32xf32>
      %33 = arith.mulf %23, %32 : vector<16x32xf32>
      %c0_21 = arith.constant 0 : index
      %c0_22 = arith.constant 0 : index
      %34 = vector.load %arg6[%c0_21, %c0_22] : memref<1x32xf32, #tpu.memory_space<vmem>>, vector<1x32xf32>
      %35 = vector.broadcast %34 : vector<1x32xf32> to vector<16x32xf32>
      %36 = arith.mulf %33, %35 : vector<16x32xf32>
      %c0_23 = arith.constant 0 : index
      %c0_24 = arith.constant 0 : index
      %37 = vector.load %arg7[%c0_23, %c0_24] : memref<1x32xf32, #tpu.memory_space<vmem>>, vector<1x32xf32>
      %38 = vector.broadcast %37 : vector<1x32xf32> to vector<16x32xf32>
      %39 = arith.addf %36, %38 : vector<16x32xf32>
      %c0_25 = arith.constant 0 : index
      %c0_26 = arith.constant 0 : index
      %40 = vector.load %arg8[%c0_25, %c0_26] : memref<16x32xf32, #tpu.memory_space<vmem>>, vector<16x32xf32>
      tpu.vector_store %arg8[%c0_25, %c0_26], %39 {strides = array<i32>} : memref<16x32xf32, #tpu.memory_space<vmem>>, vector<16x32xf32>,
    } else {
    }
    return
  }
  func.func @transform_0(%arg0: i32, %arg1: i32) -> (i32, i32) {
    %c0_i32 = arith.constant 0 : i32
    return %arg0, %arg1 : i32, i32
  }
  func.func @transform_1(%arg0: i32, %arg1: i32) -> (i32, i32) {
    %c0_i32 = arith.constant 0 : i32
    %c0_i32_0 = arith.constant 0 : i32
    return %arg1, %c0_i32 : i32, i32
  }
  func.func @transform_2(%arg0: i32, %arg1: i32) -> (i32, i32) {
    %c0_i32 = arith.constant 0 : i32
    %c0_i32_0 = arith.constant 0 : i32
    %c0_i32_1 = arith.constant 0 : i32
    return %c0_i32, %c0_i32_0 : i32, i32
  }
  func.func @transform_3(%arg0: i32, %arg1: i32) -> (i32, i32) {
    %c0_i32 = arith.constant 0 : i32
    %c0_i32_0 = arith.constant 0 : i32
    return %arg0, %c0_i32 : i32, i32
  }
  func.func @transform_4(%arg0: i32, %arg1: i32) -> (i32, i32) {
    %c0_i32 = arith.constant 0 : i32
    %c0_i32_0 = arith.constant 0 : i32
    %c0_i32_1 = arith.constant 0 : i32
    return %c0_i32, %c0_i32_0 : i32, i32
  }
  func.func @transform_5(%arg0: i32, %arg1: i32) -> (i32, i32) {
    %c0_i32 = arith.constant 0 : i32
    %c0_i32_0 = arith.constant 0 : i32
    %c0_i32_1 = arith.constant 0 : i32
    return %c0_i32, %c0_i32_0 : i32, i32
  }
  func.func @transform_6(%arg0: i32, %arg1: i32) -> (i32, i32) {
    %c0_i32 = arith.constant 0 : i32
    %c0_i32_0 = arith.constant 0 : i32
    return %arg0, %c0_i32 : i32, i32
  }
}

</mosaic_0001>

<bundles_post_ra>
// kernel: tpu_custom_call.1
= control target key start
LH: loop header
LB: loop body
LE: loop exit
PB: predicated region body
PF: predicated region fallthrough
CT: control target
= control target key end

     0   :  { %vm43_vm0 = vcmask 523264   ;;  %vm28_vm1 = vcmask 261120   ;;  %v293_v5 = vmov 0.0   ;;  %s401_s0 = inlined_call_operand.vmem [shape: f32[16,64], index: 0, kind: input, shape index: {}]   ;;  %s402_s1 = inlined_call_operand.vmem [shape: f32[64,32], index: 1, kind: input, shape index: {}]   ;;  %s403_s2 = inlined_call_operand.vmem [shape: f32[1,32], index: 2, kind: input, shape index: {}]   ;;  %s404_s3 = inlined_call_operand.vmem [shape: f32[16,32], index: 3, kind: input, shape index: {}]   ;;  %s405_s4 = inlined_call_operand.vmem [shape: f32[1,32], index: 4, kind: input, shape index: {}]   ;;  %s406_s5 = inlined_call_operand.vmem [shape: f32[1,32], index: 5, kind: input, shape index: {}]   ;;  %s407_s6 = inlined_call_operand.hbm [shape: f32[16,32], index: 6, kind: output, shape index: {}]  }
   0x1   :  { %v35_v0 = vld [vmem:[%s402_s1] sm:$0xff]  ;;  %v36_v1 = vld [vmem:[%s402_s1 + $0x8] sm:$0xff]  ;;  %v37_v2 = vld [vmem:[%s402_s1 + $0x10] sm:$0xff]  ;;  %30 = vst.msk [vmem:[#allocation2 + $0x8] sm:$0xff] %vm28_vm1, %v293_v5 }
   0x2   :  { %v245_v3 = vpack.c.bf16 %v36_v1, %v35_v0  ;;  %v38_v4 = vld [vmem:[%s402_s1 + $0x18] sm:$0xff]  ;;  %29 = vst.msk [vmem:[#allocation2] sm:$0xff] %vm28_vm1, %v293_v5  ;;  %v39_v7 = vld [vmem:[%s402_s1 + $0x20] sm:$0xff]  ;;  %v40_v8 = vld [vmem:[%s402_s1 + $0x28] sm:$0xff] }
   0x3   :  { %v249_v6 = vpack.c.bf16 %v38_v4, %v37_v2  ;;  %v33_v9 = vld [vmem:[%s401_s0] sm:$0xff] }
   0x4   :  { %246 = vmatprep.subr.bf16.mxu0 %v245_v3  ;;  %242 = vmatprep.mubr.msk.f32.mxu0 %vm43_vm0, %v33_v9 }
   0x5   :  { %11 = vsyncpa [#allocation4], 0  ;;  %248 = vmatpush3.bf16.msra.mxu0 %v245_v3  ;;  %v253_v10 = vpack.c.bf16 %v40_v8, %v39_v7  ;;  %v41_v11 = vld [vmem:[%s402_s1 + $0x30] sm:$0xff]  ;;  %v42_v12 = vld [vmem:[%s402_s1 + $0x38] sm:$0xff]  ;;  %s294_s23 = smov [#allocation3]  }
   0x6   :  { %250 = vmatprep.subr.bf16.mxu0 %v249_v6  ;;  %v257_v13 = vpack.c.bf16 %v42_v12, %v41_v11  ;;  %v34_v14 = vld [vmem:[%s401_s0 + $0x8] sm:$0xff]  ;;  %v213_v21 = vld [vmem:[%s403_s2] ss:$0 sm:$0xff]  ;;  %s200_s24 = sshll.u32 %s294_s23, 4  ;;  %s201_s24 = int_to_ptr.vmem [resolvable:$true] %s200_s24 }
   0x7   :  { %v144_v24 = vld [vmem:[%s404_s3] sm:$0xff]  ;;  %v145_v27 = vld [vmem:[%s404_s3 + $0x8] sm:$0xff]  ;;  %s269_s25 = scalar_lea.vmem %s201_s24, 256  ;;  %p274_p1 = scmp.lt.s32.totalorder %s201_s24, %s201_s24 }
   0x8   :  { %v32_v15 = vld [vmem:[#allocation2 + $0x8] sm:$0xff]  ;;  %v214_v49 = vld [vmem:[%s405_s4] ss:$0 sm:$0xff]  ;;  %p270_p0 = scmp.ne.s32.totalorder %s201_s24, %s269_s25  ;;  %p275_p2 = scmp.lt.s32.totalorder %s269_s25, %s269_s25 }
   0x9   :  { %252 = vmatpush3.bf16.msra.mxu0 %v249_v6  ;;  %v31_v16 = vld [vmem:[#allocation2] sm:$0xff] }
   0xa   :  { %254 = vmatprep.subr.bf16.mxu0 %v253_v10  ;;  %v215_v51 = vld [vmem:[%s406_s5] ss:$0 sm:$0xff]  ;;  %p276_p3 = por %p275_p2, %p274_p1 }
   0xc   :  { %p277_p4 = pnand %p276_p3, %p270_p0 }
   0xd   :  { %256 = vmatpush3.bf16.msra.mxu0 %v253_v10 }
   0xe   :  { %258 = vmatprep.subr.bf16.mxu0 %v257_v13 }
  0x11   :  { %260 = vmatpush3.bf16.msra.mxu0 %v257_v13 }
  0x14   :  { %243 = vmatmul.mubr.msk.f32.vlgmr.msra.gmra.mrb[0].mxu0 %vm43_vm0, %v34_v14 }
  0xe7   :  { %v244_v17 = vpop.f32.mrb[0].mxu0 }
  0xe8   :  { %v126_v18 = vadd.f32 %v244_v17, %v32_v15  ;;  %v116_v19 = vpop.f32.mrb[1].mxu0 }
  0xe9   :  { %v125_v20 = vadd.f32 %v116_v19, %v31_v16 }
  0xea   :  { %129 = vst.msk [vmem:[#allocation2 + $0x8] sm:$0xff] %vm28_vm1, %v126_v18 }
  0xeb   :  { %128 = vst.msk [vmem:[#allocation2] sm:$0xff] %vm28_vm1, %v125_v20 }
  0xf1   :  { %v134_v22 = vld [vmem:[#allocation2 + $0x8] sm:$0xff] }
  0xf2   :  { %v133_v23 = vld [vmem:[#allocation2] sm:$0xff]  ;;  %v143_v26 = vadd.f32 %v213_v21, %v134_v22 }
  0xf3   :  { %v142_v25 = vadd.f32 %v213_v21, %v133_v23 }
  0xf4   :  { %v147_v30 = vadd.f32 %v145_v27, %v143_v26 }
  0xf5   :  { %v146_v28 = vadd.f32 %v144_v24, %v142_v25 }
  0xf6   :  { %v151_v31 = vsel %vm28_vm1, %v147_v30, 0.0 }
  0xf7   :  { %v148_v29 = vsel %vm28_vm1, %v146_v28, 0.0 }
  0xf8   :  { %149 = vadd.xlane.f32.xlu0 %v148_v29 }
  0xfc   :  { %152 = vadd.xlane.f32.xlu0 %v151_v31 }
 0x185   :  { %v150_v32 = vpop.xlane.xlu0 %149 }
 0x186   :  { %v155_v33 = vmul.f32 0.03125, %v150_v32 }
 0x188   :  { %v157_v34 = vsub.f32 %v146_v28, %v155_v33 }
 0x189   :  { %v153_v35 = vpop.xlane.xlu0 %152 }
 0x18a   :  { %v156_v36 = vmul.f32 0.03125, %v153_v35  ;;  %v159_v37 = vmul.f32 %v157_v34, %v157_v34 }
 0x18c   :  { %v158_v38 = vsub.f32 %v147_v30, %v156_v36  ;;  %v161_v39 = vsel %vm28_vm1, %v159_v37, 0.0 }
 0x18d   :  { %162 = vadd.xlane.f32.xlu1 %v161_v39 }
 0x18e   :  { %v160_v40 = vmul.f32 %v158_v38, %v158_v38 }
 0x190   :  { %v164_v41 = vsel %vm28_vm1, %v160_v40, 0.0 }
 0x191   :  { %165 = vadd.xlane.f32.xlu1 %v164_v41 }
 0x21a   :  { %v163_v42 = vpop.xlane.xlu1 %162 }
 0x21b   :  { %v167_v43 = vmul.f32 0.03125, %v163_v42 }
 0x21d   :  { %v169_v44 = vadd.f32 1e-12, %v167_v43 }
 0x21e   :  { %v166_v45 = vpop.xlane.xlu1 %165 }
 0x21f   :  { %265 = vrsqrt.f32 %v169_v44  ;;  %v168_v46 = vmul.f32 0.03125, %v166_v45 }
 0x221   :  { %v170_v47 = vadd.f32 1e-12, %v168_v46 }
 0x223   :  { %267 = vrsqrt.f32 %v170_v47 }
 0x229   :  { %v266_v48 = vpop.eup %265 }
 0x22a   :  { %v173_v50 = vmul.f32 %v266_v48, %v157_v34 }
 0x22c   :  { %v182_v52 = vmul.f32 %v214_v49, %v173_v50 }
 0x22d   :  { %v268_v53 = vpop.eup %267 }
 0x22e   :  { %v174_v54 = vmul.f32 %v268_v53, %v158_v38  ;;  %v191_v55 = vadd.f32 %v215_v51, %v182_v52 }
 0x230   :  { %v183_v56 = vmul.f32 %v214_v49, %v174_v54  ;;  %193 = vst.msk [vmem:[#allocation3] sm:$0xff] %vm28_vm1, %v191_v55 }
 0x232   :  { %v192_v57 = vadd.f32 %v215_v51, %v183_v56 }
 0x234   :  { %194 = vst.msk [vmem:[#allocation3 + $0x8] sm:$0xff] %vm28_vm1, %v192_v57 }
 0x235   :  { %280 = shalt.err (!%p277_p4)
}
 0x236   :  { %s281_s26 = scalar_lea.hbm %s407_s6, 256 }
 0x237   :  { %p282_p5 = scmp.ne.s32.totalorder %s407_s6, %s281_s26  ;;  %p285_p6 = scmp.lt.u32.totalorder %s281_s26, %s407_s6 }
 0x239   :  { %p287_p7 = pnand %p285_p6, %p282_p5 }
 0x23b   :  { %290 = shalt.err (!%p287_p7)
}
 0x23c   :  { %s295_s7 = smov 128   ;;  %s296_s8 = smov 8  }
 0x23d   :  { %206 = dma.vmem_to_hbm [thread:$0]  %s201_s24, 256, %s407_s6, [#allocation4], %s295_s7, %s295_s7, %s296_s8  }
 0x23e   :  { %291 = dma.done.wait [#allocation4], 256  }
 0x23f   :  { %292 = vsyncadd [#allocation4], 4294967040 }
 0x240   :  { %210 = vsyncpa [#allocation4], 1 }

</bundles_post_ra>
